<compile_context>
chip_gen: v7x
topology: tpu7x:2x2x1
jax: 0.10.0
libtpu: 0.0.40
codegen_flags: <defaults>
</compile_context>

<pallas_src>
import functools
import math

import jax
import jax.numpy as jnp
import numpy as np
from jax.experimental import pallas as pl
from jax.experimental.pallas import tpu as pltpu

LANE = 128
SUBLANE = 8


def _round_up(n, m):
    return ((n + m - 1) // m) * m


# ----------------------------------------------------------------------------
# Pallas kernel 1: linear classifier  (B*T, D) @ (D, Lp) + (1, Lp), K-tiled
# ----------------------------------------------------------------------------
def _linear_kernel(x_ref, w_ref, b_ref, o_ref, acc_ref):
    # x stays in its HBM dtype; cast to bf16 in-register right before the MXU
    # (free VPU filler under the matmul, avoids a separate HBM cast pass).
    @pl.when(pl.program_id(1) == 0)
    def _():
        acc_ref[...] = jnp.zeros_like(acc_ref)

    acc_ref[...] += jnp.dot(x_ref[...].astype(jnp.bfloat16), w_ref[...],
                            preferred_element_type=jnp.float32)

    @pl.when(pl.program_id(1) == pl.num_programs(1) - 1)
    def _():
        o_ref[...] = acc_ref[...] + b_ref[...]


def classifier_forward(x, weight, bias, *, tile_rows=512, tile_k=512):
    """logits = x @ weight.T + bias   (bf16 MXU operands, f32 accumulation).

    Row-tiled over the flattened (B*T) axis ("parallel" -> megacore) and K-tiled over D
    ("arbitrary", accumulator in VMEM scratch) so the VMEM footprint is bounded regardless
    of D (v7x has only 64 MiB physical VMEM / 32 MiB default scoped).  Label dim padded to
    128 (256 when L > 128: full v6e/v7x MXU N tile) so every output store is an unmasked
    full-lane vst.
    """
    B, T, D = x.shape
    L = weight.shape[0]
    # 128-lane pad; full 256-wide MXU N tile when L > 128 (also a 128-multiple, ok on v5e).
    Lp = LANE if L <= LANE else _round_up(L, 2 * LANE)
    N = B * T
    TM = min(tile_rows, _round_up(N, SUBLANE))
    Np = _round_up(N, TM)

    if D <= 1024:
        TK, Dp = D, D                       # single K block, no D padding
    else:
        TK = min(tile_k, 1024)
        Dp = _round_up(D, TK)

    x2 = x.reshape(N, D)                    # native dtype; cast happens inside the kernel
    if Np != N or Dp != D:
        x2 = jnp.pad(x2, ((0, Np - N), (0, Dp - D)))
    wt = jnp.zeros((Dp, Lp), jnp.bfloat16).at[:D, :L].set(weight.T.astype(jnp.bfloat16))
    b2 = jnp.zeros((1, Lp), jnp.float32).at[:, :L].set(bias.astype(jnp.float32))

    xb = jnp.dtype(x2.dtype).itemsize
    vmem_est = (2 * TM * TK * xb + 2 * TK * Lp * 2 + 2 * Lp * 4
                + 2 * TM * Lp * 4 + TM * Lp * 4)
    vmem_limit = int(min(100 * 2**20, max(32 * 2**20, 2 * vmem_est)))

    out = pl.pallas_call(
        _linear_kernel,
        out_shape=jax.ShapeDtypeStruct((Np, Lp), jnp.float32),
        grid=(Np // TM, Dp // TK),
        in_specs=[
            pl.BlockSpec((TM, TK), lambda i, k: (i, k)),
            pl.BlockSpec((TK, Lp), lambda i, k: (k, 0)),
            pl.BlockSpec((1, Lp), lambda i, k: (0, 0)),
        ],
        out_specs=pl.BlockSpec((TM, Lp), lambda i, k: (i, 0)),
        scratch_shapes=[pltpu.VMEM((TM, Lp), jnp.float32)],
        compiler_params=pltpu.CompilerParams(
            dimension_semantics=("parallel", "arbitrary"),
            vmem_limit_bytes=vmem_limit),
    )(x2, wt, b2)
    return out[:N, :L].reshape(B, T, L)


# ----------------------------------------------------------------------------
# Pallas kernel 2: CRF negative log-likelihood, batch on the lane axis
# ----------------------------------------------------------------------------
def _crf_nll_kernel(logits_ref, tags_ref, mask_ref, trans_ref, start_ref, end_ref,
                    out_ref, *, batch_size):
    # logits_ref: (T, L, TB) f32 time-major emissions, batch on lanes
    # tags_ref:   (T, 1, TB) i32
    # mask_ref:   (T, 1, TB) f32 in {0,1}
    # trans_ref:  (L, L)   trans[i, j] = score(i -> j)
    # start_ref / end_ref: (L, 1)
    # out_ref:    (1, TB)  per-row NLL (0 for padded batch lanes), lane-dense store
    T, L, TB = logits_ref.shape
    trans = trans_ref[...]                                   # (L, L)
    trans3 = trans[:, :, None]                               # (L, L, 1)  hoisted broadcast
    start = start_ref[...]                                   # (L, 1)
    end = end_ref[...]                                       # (L, 1)
    lab_iota = jax.lax.broadcasted_iota(jnp.int32, (L, TB), 0)   # hoisted

    emit0 = logits_ref[0]                                    # (L, TB)
    m0 = mask_ref[0]                                         # (1, TB)
    oh0 = (lab_iota == tags_ref[0]).astype(jnp.float32)      # (L, TB)

    # log-partition init (AllenNLP _input_likelihood) and gold-path init (_joint_likelihood)
    alpha0 = start + emit0                                   # (L, TB)
    score0 = (jnp.sum(oh0 * start, axis=0, keepdims=True)
              + jnp.sum(oh0 * emit0, axis=0, keepdims=True) * m0)     # (1, TB)

    def step(t, carry):
        alpha, score, prev_oh, last_oh = carry
        emit_t = logits_ref[t]                               # (L, TB)
        mt = mask_ref[t]                                     # (1, TB)
        oh_t = (lab_iota == tags_ref[t]).astype(jnp.float32)

        # ---- forward recurrence: reduce over prev-tag axis 0 (cross-vreg, VPU) ----
        inner = alpha[:, None, :] + trans3 + emit_t[None, :, :]       # (L, L, TB)
        m = jnp.max(inner, axis=0)                                    # (L, TB)
        new_alpha = jnp.log(jnp.sum(jnp.exp(inner - m[None, :, :]), axis=0)) + m
        alpha = jnp.where(mt > 0.0, new_alpha, alpha)                 # single vselect

        # ---- gold-path increments (fused, no T-sized temporaries) ----
        emit_sc = jnp.sum(oh_t * emit_t, axis=0, keepdims=True) * mt  # (1, TB)
        tr_sel = jnp.sum(trans3 * oh_t[None, :, :], axis=1)           # (L, TB) = trans[:, tag_t]
        trans_sc = jnp.sum(prev_oh * tr_sel, axis=0, keepdims=True) * mt
        score = score + emit_sc + trans_sc

        last_oh = jnp.where(mt > 0.0, oh_t, last_oh)         # one-hot of last unmasked tag
        return alpha, score, oh_t, last_oh

    alpha, score, _, last_oh = jax.lax.fori_loop(
        1, T, step, (alpha0, score0, oh0, oh0), unroll=(2 if T > 2 else 1))

    # log partition
    stops = alpha + end                                      # (L, TB)
    ms = jnp.max(stops, axis=0, keepdims=True)               # (1, TB)
    denom = jnp.log(jnp.sum(jnp.exp(stops - ms), axis=0, keepdims=True)) + ms

    # end transition for the last unmasked tag
    score = score + jnp.sum(last_oh * end, axis=0, keepdims=True)

    # zero out internal batch-padding lanes; lane-dense (1, TB) store
    row = pl.program_id(0) * TB + jax.lax.broadcasted_iota(jnp.int32, (1, TB), 1)
    out_ref[...] = jnp.where(row < batch_size, denom - score, 0.0)


def crf_nll(logits, labels, mask, trans, start_t, end_t, *, batch_tile=128):
    """loss = -sum_b (joint_score_b - log_partition_b), batch on the 128-lane axis."""
    B, T, L = logits.shape
    TB = min(batch_tile, _round_up(B, SUBLANE))
    Bp = _round_up(B, TB)

    # time-major, batch-on-lanes layouts so the recurrence dynamically indexes the leading
    # (time) axis and every vector op runs on (nearly) full 128-lane vregs.
    # TODO(synk): the classifier out_spec could emit this layout directly and skip these passes.
    logits_t = jnp.transpose(logits.astype(jnp.float32), (1, 2, 0))          # (T, L, B)
    tags_t = jnp.transpose(labels.astype(jnp.int32), (1, 0))[:, None, :]     # (T, 1, B)
    mask_t = jnp.transpose(mask.astype(jnp.float32), (1, 0))[:, None, :]     # (T, 1, B)
    if Bp != B:
        pad = ((0, 0), (0, 0), (0, Bp - B))
        logits_t = jnp.pad(logits_t, pad)
        tags_t = jnp.pad(tags_t, pad)
        mask_t = jnp.pad(mask_t, pad)

    vmem_est = 2 * (T * L * TB * 4 + 2 * T * TB * 4) + (L * L + 2 * L) * 4 + 2 * TB * 4
    vmem_limit = int(min(100 * 2**20, max(32 * 2**20, 2 * vmem_est)))

    kernel = functools.partial(_crf_nll_kernel, batch_size=B)
    per_row = pl.pallas_call(
        kernel,
        out_shape=jax.ShapeDtypeStruct((1, Bp), jnp.float32),
        grid=(Bp // TB,),
        in_specs=[
            pl.BlockSpec((T, L, TB), lambda b: (0, 0, b)),
            pl.BlockSpec((T, 1, TB), lambda b: (0, 0, b)),
            pl.BlockSpec((T, 1, TB), lambda b: (0, 0, b)),
            pl.BlockSpec((L, L), lambda b: (0, 0)),
            pl.BlockSpec((L, 1), lambda b: (0, 0)),
            pl.BlockSpec((L, 1), lambda b: (0, 0)),
        ],
        out_specs=pl.BlockSpec((1, TB), lambda b: (0, b)),
        compiler_params=pltpu.CompilerParams(
            dimension_semantics=("parallel",),
            vmem_limit_bytes=vmem_limit),
    )(logits_t, tags_t, mask_t,
      trans.astype(jnp.float32),
      start_t.reshape(L, 1).astype(jnp.float32),
      end_t.reshape(L, 1).astype(jnp.float32))
    return jnp.sum(per_row)


# ----------------------------------------------------------------------------
# Viterbi decode (inference path when labels is None).
# TODO(synk): Viterbi backtracking (data-dependent backpointer gather chain and
# variable-length path output) has no clean Pallas equivalent; kept in plain JAX.
# ----------------------------------------------------------------------------
def viterbi_decode(logits, mask, trans, start_t, end_t):
    B, T, L = logits.shape
    lengths = jnp.sum(mask, axis=1).astype(jnp.int32)
    alpha = start_t[None, :] + logits[:, 0, :]

    def fwd(alpha, t):
        scores = alpha[:, :, None] + trans[None, :, :] + logits[:, t, :][:, None, :]
        best_prev = jnp.argmax(scores, axis=1).astype(jnp.int32)       # (B, L)
        new_alpha = jnp.max(scores, axis=1)
        valid = (mask[:, t] > 0)[:, None]
        bp = jnp.where(valid, best_prev, jnp.arange(L, dtype=jnp.int32)[None, :])
        return jnp.where(valid, new_alpha, alpha), bp

    alpha, bps = jax.lax.scan(fwd, alpha, jnp.arange(1, T))             # bps: (T-1, B, L)
    last_tag = jnp.argmax(alpha + end_t[None, :], axis=1).astype(jnp.int32)

    def back(tag, bp_t):
        prev = jnp.take_along_axis(bp_t, tag[:, None], axis=1)[:, 0]
        return prev, tag

    first_tag, rest = jax.lax.scan(back, last_tag, bps, reverse=True)   # rest: (T-1, B)
    path = jnp.concatenate([first_tag[None, :], rest], axis=0).T        # (B, T)
    # pad_sequence_to_length: positions >= length filled with 0
    return jnp.where(jnp.arange(T)[None, :] < lengths[:, None], path, 0)


# ----------------------------------------------------------------------------
# Module wrapper (parameters initialized deterministically in-script)
# ----------------------------------------------------------------------------
class CRFOutputLayer:
    def __init__(self, in_dim, num_labels, key):
        self.num_labels = num_labels
        k1, k2, k3, k4, k5 = jax.random.split(key, 5)
        bound = 1.0 / math.sqrt(in_dim)
        self.weight = jax.random.uniform(k1, (num_labels, in_dim), jnp.float32,
                                         -bound, bound)
        self.bias = jax.random.uniform(k2, (num_labels,), jnp.float32, -bound, bound)
        xav = math.sqrt(2.0 / (num_labels + num_labels))                # xavier_normal_
        self.transitions = jax.random.normal(k3, (num_labels, num_labels),
                                             jnp.float32) * xav
        self.start_transitions = jax.random.normal(k4, (num_labels,), jnp.float32)
        self.end_transitions = jax.random.normal(k5, (num_labels,), jnp.float32)

    def __call__(self, x, mask, labels=None):
        logits = classifier_forward(x, self.weight, self.bias)
        outputs = {}
        if labels is not None:
            outputs['loss'] = crf_nll(logits, labels, mask, self.transitions,
                                      self.start_transitions, self.end_transitions)
        else:
            outputs['predicted_label'] = viterbi_decode(
                logits, mask, self.transitions,
                self.start_transitions, self.end_transitions)
            outputs['logits'] = logits
        return outputs


# ----------------------------------------------------------------------------
# Plain-JAX reference (for correctness check of the Pallas loss kernel)
# ----------------------------------------------------------------------------
def crf_nll_reference(logits, tags, mask, trans, start_t, end_t):
    B, T, L = logits.shape
    alpha = start_t[None, :] + logits[:, 0, :]
    for t in range(1, T):
        inner = alpha[:, :, None] + trans[None, :, :] + logits[:, t, :][:, None, :]
        new_alpha = jax.scipy.special.logsumexp(inner, axis=1)
        mt = mask[:, t][:, None]
        alpha = new_alpha * mt + alpha * (1.0 - mt)
    denom = jax.scipy.special.logsumexp(alpha + end_t[None, :], axis=1)

    score = start_t[tags[:, 0]]
    for i in range(T - 1):
        cur, nxt = tags[:, i], tags[:, i + 1]
        trans_score = trans[cur, nxt]
        emit = logits[jnp.arange(B), i, cur]
        score = score + trans_score * mask[:, i + 1] + emit * mask[:, i]
    last_index = jnp.sum(mask, axis=1).astype(jnp.int32) - 1
    last_tags = tags[jnp.arange(B), last_index]
    last_emit = logits[jnp.arange(B), T - 1, last_tags]
    score = score + end_t[last_tags] + last_emit * mask[:, T - 1]
    return -jnp.sum(score - denom)


if __name__ == "__main__":
    B, T, D, L = 2, 8, 32, 5
    key = jax.random.PRNGKey(0)
    kp, kx, kl = jax.random.split(key, 3)

    model = CRFOutputLayer(D, L, kp)
    x = jax.random.normal(kx, (B, T, D), jnp.float32)
    mask = jnp.array([[1.0] * T,
                      [1.0] * (T - 2) + [0.0, 0.0]], dtype=jnp.float32)
    labels = jax.random.randint(kl, (B, T), 0, L, jnp.int32)

    # training path (labels given -> loss)
    out_train = model(x, mask, labels)
    loss = jax.block_until_ready(out_train['loss'])

    # inference path (no labels -> predicted_label + logits)
    out_infer = model(x, mask)
    jax.block_until_ready(out_infer['predicted_label'])
    jax.block_until_ready(out_infer['logits'])

    # correctness checks vs plain-JAX reference (same bf16-operand / f32-accum matmul)
    logits_ref = (jnp.dot(x.reshape(B * T, D).astype(jnp.bfloat16),
                          model.weight.T.astype(jnp.bfloat16),
                          preferred_element_type=jnp.float32).reshape(B, T, L)
                  + model.bias)
    ref_loss = crf_nll_reference(logits_ref, labels, mask, model.transitions,
                                 model.start_transitions, model.end_transitions)
    np.testing.assert_allclose(np.asarray(out_infer['logits']), np.asarray(logits_ref),
                               rtol=1e-4, atol=1e-4)
    np.testing.assert_allclose(float(loss), float(ref_loss), rtol=1e-4, atol=1e-4)
    assert out_infer['predicted_label'].shape == (B, T)

    print("KERNEL_OK")
</pallas_src>

<mosaic_0001>
module attributes {stable_mosaic.version = 11 : i64} {
  func.func @_linear_kernel(%arg0: i32, %arg1: i32, %arg2: memref<16x32xf32, #tpu.memory_space<vmem>>, %arg3: memref<32x128xbf16, #tpu.memory_space<vmem>>, %arg4: memref<1x128xf32, #tpu.memory_space<vmem>>, %arg5: memref<16x128xf32, #tpu.memory_space<vmem>>, %arg6: memref<16x128xf32, #tpu.memory_space<vmem>>) attributes {dimension_semantics = [#tpu.dimension_semantics<parallel>, #tpu.dimension_semantics<arbitrary>], iteration_bounds = array<i64: 1, 1>, scalar_prefetch = 0 : i64, scratch_operands = 1 : i64, tpu.core_type = #tpu.core_type<tc>, window_params = [{transform_indices = @transform_0, window_bounds = array<i64: 16, 32>}, {transform_indices = @transform_1, window_bounds = array<i64: 32, 128>}, {pipeline_mode = #tpu.pipeline_mode<synchronous>, transform_indices = @transform_2, window_bounds = array<i64: 1, 128>}, {transform_indices = @transform_3, window_bounds = array<i64: 16, 128>}]} {
    %c0_i32 = arith.constant 0 : i32
    %0 = arith.cmpi eq, %arg1, %c0_i32 : i32
    %1 = arith.extui %0 : i1 to i32
    %c0_i32_0 = arith.constant 0 : i32
    %2 = arith.cmpi ne, %1, %c0_i32_0 : i32
    scf.if %2 {
      %cst_10 = arith.constant 0.000000e+00 : f32
      %13 = vector.broadcast %cst_10 : f32 to vector<16x128xf32>
      %c0_11 = arith.constant 0 : index
      %c0_12 = arith.constant 0 : index
      %14 = vector.load %arg6[%c0_11, %c0_12] : memref<16x128xf32, #tpu.memory_space<vmem>>, vector<16x128xf32>
      tpu.vector_store %arg6[%c0_11, %c0_12], %13 {strides = array<i32>} : memref<16x128xf32, #tpu.memory_space<vmem>>, vector<16x128xf32>,
    } else {
    }
    %c0 = arith.constant 0 : index
    %c0_1 = arith.constant 0 : index
    %3 = vector.load %arg6[%c0, %c0_1] : memref<16x128xf32, #tpu.memory_space<vmem>>, vector<16x128xf32>
    %c0_2 = arith.constant 0 : index
    %c0_3 = arith.constant 0 : index
    %4 = vector.load %arg2[%c0_2, %c0_3] : memref<16x32xf32, #tpu.memory_space<vmem>>, vector<16x32xf32>
    %5 = arith.truncf %4 : vector<16x32xf32> to vector<16x32xbf16>
    %c0_4 = arith.constant 0 : index
    %c0_5 = arith.constant 0 : index
    %6 = vector.load %arg3[%c0_4, %c0_5] : memref<32x128xbf16, #tpu.memory_space<vmem>>, vector<32x128xbf16>
    %cst = arith.constant dense<0.000000e+00> : vector<16x128xf32>
    %7 = tpu.matmul %5, %6, %cst {dimension_numbers = #tpu.dot_dimension_numbers<[1], [0], [0], [1], [0, 0, 1, 1], [], []>} : vector<16x32xbf16>, vector<32x128xbf16>, vector<16x128xf32> -> vector<16x128xf32>
    %8 = arith.addf %3, %7 : vector<16x128xf32>
    %c0_6 = arith.constant 0 : index
    %c0_7 = arith.constant 0 : index
    %9 = vector.load %arg6[%c0_6, %c0_7] : memref<16x128xf32, #tpu.memory_space<vmem>>, vector<16x128xf32>
    tpu.vector_store %arg6[%c0_6, %c0_7], %8 {strides = array<i32>} : memref<16x128xf32, #tpu.memory_space<vmem>>, vector<16x128xf32>,
    %c0_i32_8 = arith.constant 0 : i32
    %10 = arith.cmpi eq, %arg1, %c0_i32_8 : i32
    %11 = arith.extui %10 : i1 to i32
    %c0_i32_9 = arith.constant 0 : i32
    %12 = arith.cmpi ne, %11, %c0_i32_9 : i32
    scf.if %12 {
      %c0_10 = arith.constant 0 : index
      %c0_11 = arith.constant 0 : index
      %13 = vector.load %arg6[%c0_10, %c0_11] : memref<16x128xf32, #tpu.memory_space<vmem>>, vector<16x128xf32>
      %c0_12 = arith.constant 0 : index
      %c0_13 = arith.constant 0 : index
      %14 = vector.load %arg4[%c0_12, %c0_13] : memref<1x128xf32, #tpu.memory_space<vmem>>, vector<1x128xf32>
      %15 = vector.broadcast %14 : vector<1x128xf32> to vector<16x128xf32>
      %16 = arith.addf %13, %15 : vector<16x128xf32>
      %c0_14 = arith.constant 0 : index
      %c0_15 = arith.constant 0 : index
      %17 = vector.load %arg5[%c0_14, %c0_15] : memref<16x128xf32, #tpu.memory_space<vmem>>, vector<16x128xf32>
      tpu.vector_store %arg5[%c0_14, %c0_15], %16 {strides = array<i32>} : memref<16x128xf32, #tpu.memory_space<vmem>>, vector<16x128xf32>,
    } else {
    }
    return
  }
  func.func @transform_0(%arg0: i32, %arg1: i32) -> (i32, i32) {
    %c0_i32 = arith.constant 0 : i32
    return %arg0, %arg1 : i32, i32
  }
  func.func @transform_1(%arg0: i32, %arg1: i32) -> (i32, i32) {
    %c0_i32 = arith.constant 0 : i32
    %c0_i32_0 = arith.constant 0 : i32
    return %arg1, %c0_i32 : i32, i32
  }
  func.func @transform_2(%arg0: i32, %arg1: i32) -> (i32, i32) {
    %c0_i32 = arith.constant 0 : i32
    %c0_i32_0 = arith.constant 0 : i32
    %c0_i32_1 = arith.constant 0 : i32
    return %c0_i32, %c0_i32_0 : i32, i32
  }
  func.func @transform_3(%arg0: i32, %arg1: i32) -> (i32, i32) {
    %c0_i32 = arith.constant 0 : i32
    %c0_i32_0 = arith.constant 0 : i32
    return %arg0, %c0_i32 : i32, i32
  }
}

</mosaic_0001>

<bundles_post_ra>
// kernel: tpu_custom_call.1
= control target key start
LH: loop header
LB: loop body
LE: loop exit
PB: predicated region body
PF: predicated region fallthrough
CT: control target
= control target key end

     0   :  { %8 = vsyncpa [#allocation4], 0  ;;  %s326_s0 = inlined_call_operand.hbm [shape: f32[16,32], index: 0, kind: input, shape index: {}]   ;;  %s327_s1 = inlined_call_operand.hbm [shape: bf16[32,128], index: 1, kind: input, shape index: {}]   ;;  %s328_s2 = inlined_call_operand.vmem [shape: f32[1,128], index: 2, kind: input, shape index: {}]   ;;  %s329_s3 = inlined_call_operand.hbm [shape: f32[16,128], index: 3, kind: output, shape index: {}]  }
   0x1   :  { %9 = vsyncpa [#allocation7], 0 }
   0x2   :  { %10 = vsyncpa [#allocation5], 0  ;;  %s252_s12 = smov [#allocation3]   ;;  %s180_s16 = scalar_lea.hbm %s326_s0, 256 }
   0x3   :  { %s16_s13 = sshll.u32 %s252_s12, 4  ;;  %p181_p0 = scmp.ne.s32.totalorder %s326_s0, %s180_s16  ;;  %s17_s13 = int_to_ptr.vmem [resolvable:$true] %s16_s13 }
   0x4   :  { %p184_p1 = scmp.lt.u32.totalorder %s180_s16, %s326_s0 }
   0x6   :  { %p186_p2 = pnand %p184_p1, %p181_p0 }
   0x8   :  { %189 = shalt.err (!%p186_p2)
}
   0x9   :  { %s190_s21 = scalar_lea.vmem %s17_s13, 256  ;;  %p195_p4 = scmp.lt.s32.totalorder %s17_s13, %s17_s13 }
   0xa   :  { %p191_p3 = scmp.ne.s32.totalorder %s17_s13, %s190_s21  ;;  %p196_p5 = scmp.lt.s32.totalorder %s190_s21, %s190_s21 }
   0xc   :  { %p197_p6 = por %p196_p5, %p195_p4 }
   0xe   :  { %p198_p7 = pnand %p197_p6, %p191_p3 }
  0x10   :  { %201 = shalt.err (!%p198_p7)
}
  0x11   :  { %s253_s22 = smov 128   ;;  %s254_s23 = smov 8  }
  0x12   :  { %22 = dma.hbm_to_vmem [thread:$0]  %s326_s0, 256, %s17_s13, [#allocation4], %s253_s22, %s253_s22, %s254_s23  }
  0x13   :  { %s255_s26 = smov [#allocation6]   ;;  %s202_s30 = scalar_lea.hbm %s327_s1, 256 }
  0x14   :  { %s28_s27 = sshll.u32 %s255_s26, 4  ;;  %p203_p8 = scmp.ne.s32.totalorder %s327_s1, %s202_s30  ;;  %s29_s27 = int_to_ptr.vmem [resolvable:$true] %s28_s27 }
  0x15   :  { %p206_p9 = scmp.lt.u32.totalorder %s202_s30, %s327_s1 }
  0x17   :  { %p208_p10 = pnand %p206_p9, %p203_p8 }
  0x19   :  { %211 = shalt.err (!%p208_p10)
}
  0x1a   :  { %s212_s8 = scalar_lea.vmem %s29_s27, 256  ;;  %p217_p12 = scmp.lt.s32.totalorder %s29_s27, %s29_s27 }
  0x1b   :  { %p213_p11 = scmp.ne.s32.totalorder %s29_s27, %s212_s8  ;;  %p218_p13 = scmp.lt.s32.totalorder %s212_s8, %s212_s8 }
  0x1d   :  { %p219_p0 = por %p218_p13, %p217_p12 }
  0x1f   :  { %p220_p1 = pnand %p219_p0, %p213_p11 }
  0x21   :  { %223 = shalt.err (!%p220_p1)
}
  0x22   :  { %s256_s0 = smov 64   ;;  %s257_s9 = smov 4  }
  0x23   :  { %34 = dma.hbm_to_vmem [thread:$0]  %s327_s1, 256, %s29_s27, [#allocation7], %s256_s0, %s256_s0, %s257_s9  }
  0x24   :  { %246 = dma.done.wait [#allocation4], 256  }
  0x25   :  { %247 = vsyncadd [#allocation4], 4294967040 }
  0x26   :  { %248 = dma.done.wait [#allocation7], 256  }
  0x27   :  { %249 = vsyncadd [#allocation7], 4294967040  ;;  %v258_v0 = vmov 0.0   ;;  %vm259_vm0 = vmmov 0   ;;  %v178_v1 = vld [vmem:[#allocation6] sm:$0xff]   ;;  %v179_v2 = vld [vmem:[#allocation6 + $0x8] sm:$0xff]  }
  0x28   :  { %161 = vmatprep.subr.bf16.mxu0 %v258_v0  ;;  %165 = vmatprep.mubr.msk.bf16.mxu0 %vm259_vm0, %v258_v0  ;;  %v52_v3 = vld [vmem:[#allocation3] sm:$0xff]  ;;  %v53_v4 = vld [vmem:[#allocation3 + $0x8] sm:$0xff]  ;;  %vm71_vm1 = vcmask 261120   ;;  %s260_s13 = smov [#allocation8]  }
  0x29   :  { %162 = vmatpush3.bf16.msra.mxu0 %v178_v1  ;;  %v54_v5 = vpack.c.bf16 %v53_v4, %v52_v3  ;;  %v157_v6 = vld [vmem:[%s328_s2] ss:$0 sm:$0xff]  ;;  %s141_s14 = sshll.u32 %s260_s13, 4  ;;  %s142_s14 = int_to_ptr.vmem [resolvable:$true] %s141_s14 }
  0x2a   :  { %163 = vmatprep.subr.bf16.mxu0 %v258_v0  ;;  %s224_s15 = scalar_lea.vmem %s142_s14, 256  ;;  %p229_p3 = scmp.lt.s32.totalorder %s142_s14, %s142_s14 }
  0x2b   :  { %p225_p2 = scmp.ne.s32.totalorder %s142_s14, %s224_s15  ;;  %p230_p4 = scmp.lt.s32.totalorder %s224_s15, %s224_s15 }
  0x2d   :  { %164 = vmatpush3.bf16.msra.mxu0 %v179_v2  ;;  %p231_p5 = por %p230_p4, %p229_p3 }
  0x2f   :  { %p232_p6 = pnand %p231_p5, %p225_p2 }
  0x30   :  { %166 = vmatmul.mubr.msk.bf16.vlgmr.msra.gmra.mrb[0].mxu0 %vm71_vm1, %v54_v5 }
 0x103   :  { %v109_v7 = vpop.f32.mrb[0].mxu0 }
 0x104   :  { %v132_v8 = vadd.f32 %v157_v6, %v109_v7  ;;  %v167_v9 = vpop.f32.mrb[1].mxu0 }
 0x105   :  { %v112_v10 = vpop.f32.mrb[2].mxu0 }
 0x106   :  { %134 = vst [vmem:[#allocation8] sm:$0xff] %v132_v8  ;;  %v133_v11 = vadd.f32 %v157_v6, %v112_v10  ;;  %v168_v12 = vpop.f32.mrb[3].mxu0 }
 0x108   :  { %135 = vst [vmem:[#allocation8 + $0x8] sm:$0xff] %v133_v11 }
 0x109   :  { %235 = shalt.err (!%p232_p6)
}
 0x10a   :  { %s236_s17 = scalar_lea.hbm %s329_s3, 256 }
 0x10b   :  { %p237_p7 = scmp.ne.s32.totalorder %s329_s3, %s236_s17  ;;  %p240_p8 = scmp.lt.u32.totalorder %s236_s17, %s329_s3 }
 0x10d   :  { %p242_p9 = pnand %p240_p8, %p237_p7 }
 0x10f   :  { %245 = shalt.err (!%p242_p9)
}
 0x110   :  { %147 = dma.vmem_to_hbm [thread:$0]  %s142_s14, 256, %s329_s3, [#allocation5], %s253_s22, %s253_s22, %s254_s23  }
 0x111   :  { %250 = dma.done.wait [#allocation5], 256  }
 0x112   :  { %251 = vsyncadd [#allocation5], 4294967040 }
 0x113   :  { %151 = vsyncpa [#allocation4], 1 }
 0x114   :  { %152 = vsyncpa [#allocation7], 1 }
 0x115   :  { %153 = vsyncpa [#allocation5], 1 }

</bundles_post_ra>
